<compile_context>
chip_gen: v5e
topology: v5e:2x2
jax: 0.10.0
libtpu: 0.0.40
codegen_flags: <defaults>
</compile_context>

<pallas_src>
import math
import jax
import jax.numpy as jnp
from jax.experimental import pallas as pl
from jax.experimental.pallas import tpu as pltpu


def _round_up(x, m):
    return ((x + m - 1) // m) * m


def _cdiv(a, b):
    return (a + b - 1) // b


def _vmem_capacity_bytes():
    """Physical VMEM of the current TPU generation (per core)."""
    try:
        cap = int(pltpu.get_tpu_info().vmem_capacity_bytes)
        if cap > 0:
            return cap
    except Exception:
        pass
    return 64 << 20  # conservative fallback (v7x per-TC VMEM)


def _gelu_tanh(h):
    # GELU(approximate='tanh'), matching torch.nn.GELU(approximate='tanh').
    c = 0.7978845608028654  # sqrt(2/pi)
    return 0.5 * h * (1.0 + jnp.tanh(c * (h + 0.044715 * h * h * h)))


# ---------------------------------------------------------------------------
# Kernels
# ---------------------------------------------------------------------------
def _mlp_kernel_resident(x_ref, wfc_ref, bfc_ref, wproj_ref, bproj_ref, o_ref):
    # Full weights resident in VMEM: single fused pass, no accumulator,
    # no init/finalize passes over the output tile.
    h = jnp.dot(x_ref[...], wfc_ref[...], preferred_element_type=jnp.float32)
    h = h + bfc_ref[...].astype(jnp.float32)
    g = _gelu_tanh(h)
    out = jnp.dot(g.astype(wproj_ref.dtype), wproj_ref[...],
                  preferred_element_type=jnp.float32)
    o_ref[...] = (out + bproj_ref[...].astype(jnp.float32)).astype(o_ref.dtype)


def _mlp_kernel_streamed(x_ref, wfc_ref, bfc_ref, wproj_ref, bproj_ref, o_ref,
                         acc_ref):
    # Hidden (H) axis tiled; c_proj partials accumulate in f32 VMEM scratch.
    j = pl.program_id(1)

    @pl.when(j == 0)
    def _init():
        acc_ref[...] = jnp.zeros_like(acc_ref)

    h = jnp.dot(x_ref[...], wfc_ref[...], preferred_element_type=jnp.float32)
    h = h + bfc_ref[...].astype(jnp.float32)
    g = _gelu_tanh(h)
    acc_ref[...] += jnp.dot(g.astype(wproj_ref.dtype), wproj_ref[...],
                            preferred_element_type=jnp.float32)

    @pl.when(j == pl.num_programs(1) - 1)
    def _finalize():
        # b_proj is added exactly once, at the last H slice.
        o_ref[...] = (acc_ref[...] + bproj_ref[...].astype(jnp.float32)
                      ).astype(o_ref.dtype)


# ---------------------------------------------------------------------------
# Tiling policy
# ---------------------------------------------------------------------------
def _choose_tm(M, target):
    """Row tile: multiple of 8, <= target, minimizing (padded rows + fixed
    per-grid-step overhead), preferring >= 2 tiles so the 'parallel' M axis
    gives both v7x TensorCores work."""
    M8 = _round_up(M, 8)
    cap = max(8, min(_round_up(target, 8), M8))
    best_tm, best_key = cap, None
    for tm in range(8, cap + 1, 8):
        mpad = _cdiv(M, tm) * tm
        ntiles = mpad // tm
        cost = mpad + 32 * ntiles      # padded rows + ~32-row/step overhead
        key = (0 if ntiles >= 2 else 1, cost, -tm)
        if best_key is None or key < best_key:
            best_key, best_tm = key, tm
    return best_tm


def _h_tile_candidates(H):
    """Divisors of H usable as a lane-dim tile, largest first.  Prefer
    multiples of 256 (full 2x256x256 MXU feed on v6e/v7x), else 128."""
    for align in (256, 128):
        cands = [d for d in range(align, H + 1, align) if H % d == 0]
        if cands:
            return sorted(cands, reverse=True)
    return [H]


# ---------------------------------------------------------------------------
# Wrapper
# ---------------------------------------------------------------------------
def mlp_pallas(x, w_fc, b_fc, w_proj, b_proj, *, compute_dtype=None):
    """Fused GPT-2 MLP: c_proj(GELU_tanh(c_fc(x))).

    x: (B, T, D). w_fc: (D, 4D). b_fc: (4D,). w_proj: (4D, D). b_proj: (D,).
    compute_dtype: optionally cast inputs/weights (e.g. jnp.bfloat16) for
    higher MXU rate; accumulation stays f32 and the output keeps x's dtype.
    """
    B, T, D = x.shape
    Din, H = w_fc.shape
    assert Din == D and w_proj.shape == (H, D)
    assert b_fc.shape == (H,) and b_proj.shape == (D,)
    M = B * T
    out_dtype = x.dtype

    if compute_dtype is not None:
        x = x.astype(compute_dtype)
        w_fc = w_fc.astype(compute_dtype)
        b_fc = b_fc.astype(compute_dtype)
        w_proj = w_proj.astype(compute_dtype)
        b_proj = b_proj.astype(compute_dtype)

    w_itemsize = jnp.dtype(w_fc.dtype).itemsize
    x_itemsize = jnp.dtype(x.dtype).itemsize

    vmem_cap = _vmem_capacity_bytes()
    usable = vmem_cap - (10 << 20)     # reserve for compiler-internal scratch

    def act_bytes(tm, th, streaming):
        b = 2 * tm * D * x_itemsize    # x tiles (double-buffered)
        b += 2 * tm * D * x_itemsize   # out tiles (double-buffered)
        b += 2 * tm * th * 4           # h / g f32 intermediates
        b += tm * D * 4                # second-matmul f32 result
        if streaming:
            b += tm * D * 4            # f32 accumulator scratch
        return b

    # Conservative (double-buffered) full-weight footprint: even if the
    # pl.Buffered(1) single-buffer optimization is unavailable, the resident
    # path still fits.
    resident_w_bytes = 2 * (D * H + H * D + H + D) * w_itemsize

    tm_eff = th = None
    streaming = False
    for tm_try in (256, 192, 128, 64):
        tm_c = _choose_tm(M, tm_try)
        if resident_w_bytes + act_bytes(tm_c, H, False) <= usable:
            tm_eff, th = tm_c, H
            break

    if tm_eff is None:
        # Weights genuinely don't fit: stream H slices.  Large tm keeps the
        # streamed path MXU-bound (each weight byte reused ~2*tm/itemsize
        # FLOPs); shrink th before shrinking tm.
        streaming = True
        th_cands = _h_tile_candidates(H)
        for tm_try in (512, 384, 256, 128, 64):
            tm_c = _choose_tm(M, tm_try)
            for th_c in th_cands:
                w_bytes = (2 * (2 * D * th_c + th_c) * w_itemsize
                           + 2 * D * w_itemsize)
                if w_bytes + act_bytes(tm_c, th_c, True) <= usable:
                    tm_eff, th = tm_c, th_c
                    break
            if th is not None:
                break
        if th is None:
            # Last resort: smallest tiles; give the compiler its best chance.
            tm_eff, th = _choose_tm(M, 64), th_cands[-1]
        if th == H:
            streaming = False      # ended up fully resident after all

    h_tiles = H // th
    M_pad = _cdiv(M, tm_eff) * tm_eff
    m_tiles = M_pad // tm_eff

    x2 = x.reshape(M, D)
    if M_pad != M:
        x2 = jnp.pad(x2, ((0, M_pad - M), (0, 0)))
    b_fc2 = b_fc.reshape(1, H)
    b_proj2 = b_proj.reshape(1, D)

    if streaming:
        w_buf_bytes = (2 * (2 * D * th + th) * w_itemsize
                       + 2 * D * w_itemsize)
    else:
        w_buf_bytes = resident_w_bytes
    est = w_buf_bytes + act_bytes(tm_eff, th, streaming)
    vmem_limit = int(min(vmem_cap - (2 << 20),
                         max(int(est * 1.5) + (8 << 20), 32 << 20)))

    def _call(single_buffer_const):
        def const_spec(shape, index_map):
            # Grid-constant blocks: one pipeline buffer halves their VMEM.
            if single_buffer_const:
                return pl.BlockSpec(shape, index_map,
                                    pipeline_mode=pl.Buffered(1))
            return pl.BlockSpec(shape, index_map)

        if not streaming:
            grid = (m_tiles,)
            in_specs = [
                pl.BlockSpec((tm_eff, D), lambda i: (i, 0)),   # x tile
                const_spec((D, H), lambda i: (0, 0)),          # w_fc (resident)
                const_spec((1, H), lambda i: (0, 0)),          # b_fc
                const_spec((H, D), lambda i: (0, 0)),          # w_proj
                const_spec((1, D), lambda i: (0, 0)),          # b_proj
            ]
            out_specs = pl.BlockSpec((tm_eff, D), lambda i: (i, 0))
            scratch = []
            kernel = _mlp_kernel_resident
            dim_sem = ("parallel",)
        else:
            grid = (m_tiles, h_tiles)
            in_specs = [
                pl.BlockSpec((tm_eff, D), lambda i, j: (i, 0)),  # x tile
                pl.BlockSpec((D, th), lambda i, j: (0, j)),      # w_fc slice
                pl.BlockSpec((1, th), lambda i, j: (0, j)),      # b_fc slice
                pl.BlockSpec((th, D), lambda i, j: (j, 0)),      # w_proj slice
                const_spec((1, D), lambda i, j: (0, 0)),         # b_proj
            ]
            out_specs = pl.BlockSpec((tm_eff, D), lambda i, j: (i, 0))
            scratch = [pltpu.VMEM((tm_eff, D), jnp.float32)]
            kernel = _mlp_kernel_streamed
            dim_sem = ("parallel", "arbitrary")

        return pl.pallas_call(
            kernel,
            out_shape=jax.ShapeDtypeStruct((M_pad, D), out_dtype),
            grid_spec=pltpu.PrefetchScalarGridSpec(
                num_scalar_prefetch=0,
                grid=grid,
                in_specs=in_specs,
                out_specs=out_specs,
                scratch_shapes=scratch,
            ),
            compiler_params=pltpu.CompilerParams(
                dimension_semantics=dim_sem,
                vmem_limit_bytes=vmem_limit,
            ),
        )(x2, w_fc, b_fc2, w_proj, b_proj2)

    try:
        out2 = _call(True)
    except Exception:
        # pl.Buffered(1) / pipeline_mode not supported by this JAX/Mosaic:
        # retry with default double-buffering (residency check already
        # assumed the 2x footprint, so this path still fits VMEM).
        out2 = _call(False)

    return out2[:M].reshape(B, T, D)


def mlp_reference(x, w_fc, b_fc, w_proj, b_proj):
    h = jnp.dot(x, w_fc) + b_fc
    c = 0.7978845608028654
    g = 0.5 * h * (1.0 + jnp.tanh(c * (h + 0.044715 * h ** 3)))
    return jnp.dot(g, w_proj) + b_proj


def _make_params(key, D, H, dtype=jnp.float32):
    k1, k2, k3, k4 = jax.random.split(key, 4)
    bound_fc = 1.0 / math.sqrt(D)
    w_fc = jax.random.uniform(k1, (D, H), dtype, -bound_fc, bound_fc)
    b_fc = jax.random.uniform(k2, (H,), dtype, -bound_fc, bound_fc)
    bound_proj = 1.0 / math.sqrt(H)
    w_proj = jax.random.uniform(k3, (H, D), dtype, -bound_proj, bound_proj)
    b_proj = jax.random.uniform(k4, (D,), dtype, -bound_proj, bound_proj)
    return w_fc, b_fc, w_proj, b_proj


if __name__ == "__main__":
    key = jax.random.PRNGKey(0)
    k_a, k_b = jax.random.split(key)

    # Test 1: small GPT-2-like toy config (n_embd=32, hidden=128, B=2, T=8).
    B, T, D = 2, 8, 32
    H = 4 * D
    kx, kp = jax.random.split(k_a)
    x = jax.random.normal(kx, (B, T, D), dtype=jnp.float32)
    params = _make_params(kp, D, H)
    out = jax.block_until_ready(mlp_pallas(x, *params))
    ref = mlp_reference(x, *params)
    assert out.shape == (B, T, D)
    assert jnp.allclose(out, ref, atol=1e-5, rtol=1e-5), "mismatch (toy config)"

    # Test 2: lane-dense dims + ragged token count (exercises M padding path).
    B2, T2, D2 = 2, 65, 128
    H2 = 4 * D2
    kx2, kp2 = jax.random.split(k_b)
    x2 = jax.random.normal(kx2, (B2, T2, D2), dtype=jnp.float32)
    params2 = _make_params(kp2, D2, H2)
    out2 = jax.block_until_ready(mlp_pallas(x2, *params2))
    ref2 = mlp_reference(x2, *params2)
    assert out2.shape == (B2, T2, D2)
    assert jnp.allclose(out2, ref2, atol=1e-4, rtol=1e-4), "mismatch (ragged config)"

    # Test 3: optional bf16 compute path (wrapper cast; f32 accumulation/out).
    out3 = jax.block_until_ready(mlp_pallas(x, *params,
                                            compute_dtype=jnp.bfloat16))
    assert out3.shape == (B, T, D)
    assert out3.dtype == x.dtype
    assert jnp.allclose(out3, ref, atol=5e-2, rtol=5e-2), "mismatch (bf16 path)"

    print("KERNEL_OK")
</pallas_src>

<mosaic_0001>
module attributes {stable_mosaic.version = 11 : i64} {
  func.func @_mlp_kernel_resident(%arg0: i32, %arg1: memref<8x32xf32, #tpu.memory_space<vmem>>, %arg2: memref<32x128xf32, #tpu.memory_space<vmem>>, %arg3: memref<1x128xf32, #tpu.memory_space<vmem>>, %arg4: memref<128x32xf32, #tpu.memory_space<vmem>>, %arg5: memref<1x32xf32, #tpu.memory_space<vmem>>, %arg6: memref<8x32xf32, #tpu.memory_space<vmem>>) attributes {dimension_semantics = [#tpu.dimension_semantics<parallel>], iteration_bounds = array<i64: 2>, scalar_prefetch = 0 : i64, scratch_operands = 0 : i64, tpu.core_type = #tpu.core_type<tc>, window_params = [{transform_indices = @transform_0, window_bounds = array<i64: 8, 32>}, {pipeline_mode = #tpu.pipeline_mode<synchronous>, transform_indices = @transform_1, window_bounds = array<i64: 32, 128>}, {pipeline_mode = #tpu.pipeline_mode<synchronous>, transform_indices = @transform_2, window_bounds = array<i64: 1, 128>}, {pipeline_mode = #tpu.pipeline_mode<synchronous>, transform_indices = @transform_3, window_bounds = array<i64: 128, 32>}, {pipeline_mode = #tpu.pipeline_mode<synchronous>, transform_indices = @transform_4, window_bounds = array<i64: 1, 32>}, {transform_indices = @transform_5, window_bounds = array<i64: 8, 32>}]} {
    %c0 = arith.constant 0 : index
    %c0_0 = arith.constant 0 : index
    %0 = vector.load %arg1[%c0, %c0_0] : memref<8x32xf32, #tpu.memory_space<vmem>>, vector<8x32xf32>
    %c0_1 = arith.constant 0 : index
    %c0_2 = arith.constant 0 : index
    %1 = vector.load %arg2[%c0_1, %c0_2] : memref<32x128xf32, #tpu.memory_space<vmem>>, vector<32x128xf32>
    %cst = arith.constant dense<0.000000e+00> : vector<8x128xf32>
    %2 = tpu.matmul %0, %1, %cst {dimension_numbers = #tpu.dot_dimension_numbers<[1], [0], [0], [1], [0, 0, 1, 1], [], []>} : vector<8x32xf32>, vector<32x128xf32>, vector<8x128xf32> -> vector<8x128xf32>
    %c0_3 = arith.constant 0 : index
    %c0_4 = arith.constant 0 : index
    %3 = vector.load %arg3[%c0_3, %c0_4] : memref<1x128xf32, #tpu.memory_space<vmem>>, vector<1x128xf32>
    %4 = vector.broadcast %3 : vector<1x128xf32> to vector<8x128xf32>
    %5 = arith.addf %2, %4 : vector<8x128xf32>
    %cst_5 = arith.constant 5.000000e-01 : f32
    %6 = vector.broadcast %cst_5 : f32 to vector<8x128xf32>
    %7 = arith.mulf %6, %5 : vector<8x128xf32>
    %cst_6 = arith.constant 4.471500e-02 : f32
    %8 = vector.broadcast %cst_6 : f32 to vector<8x128xf32>
    %9 = arith.mulf %8, %5 : vector<8x128xf32>
    %10 = arith.mulf %9, %5 : vector<8x128xf32>
    %11 = arith.mulf %10, %5 : vector<8x128xf32>
    %12 = arith.addf %5, %11 : vector<8x128xf32>
    %cst_7 = arith.constant 0.797884583 : f32
    %13 = vector.broadcast %cst_7 : f32 to vector<8x128xf32>
    %14 = arith.mulf %13, %12 : vector<8x128xf32>
    %15 = math.tanh %14 : vector<8x128xf32>
    %cst_8 = arith.constant 1.000000e+00 : f32
    %16 = vector.broadcast %cst_8 : f32 to vector<8x128xf32>
    %17 = arith.addf %16, %15 : vector<8x128xf32>
    %18 = arith.mulf %7, %17 : vector<8x128xf32>
    %c0_9 = arith.constant 0 : index
    %c0_10 = arith.constant 0 : index
    %19 = vector.load %arg4[%c0_9, %c0_10] : memref<128x32xf32, #tpu.memory_space<vmem>>, vector<128x32xf32>
    %cst_11 = arith.constant dense<0.000000e+00> : vector<8x32xf32>
    %20 = tpu.matmul %18, %19, %cst_11 {dimension_numbers = #tpu.dot_dimension_numbers<[1], [0], [0], [1], [0, 0, 1, 1], [], []>} : vector<8x128xf32>, vector<128x32xf32>, vector<8x32xf32> -> vector<8x32xf32>
    %c0_12 = arith.constant 0 : index
    %c0_13 = arith.constant 0 : index
    %21 = vector.load %arg5[%c0_12, %c0_13] : memref<1x32xf32, #tpu.memory_space<vmem>>, vector<1x32xf32>
    %22 = vector.broadcast %21 : vector<1x32xf32> to vector<8x32xf32>
    %23 = arith.addf %20, %22 : vector<8x32xf32>
    %c0_14 = arith.constant 0 : index
    %c0_15 = arith.constant 0 : index
    %24 = vector.load %arg6[%c0_14, %c0_15] : memref<8x32xf32, #tpu.memory_space<vmem>>, vector<8x32xf32>
    tpu.vector_store %arg6[%c0_14, %c0_15], %23 {strides = array<i32>} : memref<8x32xf32, #tpu.memory_space<vmem>>, vector<8x32xf32>,
    return
  }
  func.func @transform_0(%arg0: i32) -> (i32, i32) {
    %c0_i32 = arith.constant 0 : i32
    %c0_i32_0 = arith.constant 0 : i32
    return %arg0, %c0_i32 : i32, i32
  }
  func.func @transform_1(%arg0: i32) -> (i32, i32) {
    %c0_i32 = arith.constant 0 : i32
    %c0_i32_0 = arith.constant 0 : i32
    %c0_i32_1 = arith.constant 0 : i32
    return %c0_i32, %c0_i32_0 : i32, i32
  }
  func.func @transform_2(%arg0: i32) -> (i32, i32) {
    %c0_i32 = arith.constant 0 : i32
    %c0_i32_0 = arith.constant 0 : i32
    %c0_i32_1 = arith.constant 0 : i32
    return %c0_i32, %c0_i32_0 : i32, i32
  }
  func.func @transform_3(%arg0: i32) -> (i32, i32) {
    %c0_i32 = arith.constant 0 : i32
    %c0_i32_0 = arith.constant 0 : i32
    %c0_i32_1 = arith.constant 0 : i32
    return %c0_i32, %c0_i32_0 : i32, i32
  }
  func.func @transform_4(%arg0: i32) -> (i32, i32) {
    %c0_i32 = arith.constant 0 : i32
    %c0_i32_0 = arith.constant 0 : i32
    %c0_i32_1 = arith.constant 0 : i32
    return %c0_i32, %c0_i32_0 : i32, i32
  }
  func.func @transform_5(%arg0: i32) -> (i32, i32) {
    %c0_i32 = arith.constant 0 : i32
    %c0_i32_0 = arith.constant 0 : i32
    return %arg0, %c0_i32 : i32, i32
  }
}

module attributes {stable_mosaic.version = 11 : i64} {
  func.func @_mlp_kernel_resident(%arg0: i32, %arg1: memref<8x32xf32, #tpu.memory_space<vmem>>, %arg2: memref<32x128xf32, #tpu.memory_space<vmem>>, %arg3: memref<1x128xf32, #tpu.memory_space<vmem>>, %arg4: memref<128x32xf32, #tpu.memory_space<vmem>>, %arg5: memref<1x32xf32, #tpu.memory_space<vmem>>, %arg6: memref<8x32xf32, #tpu.memory_space<vmem>>) attributes {dimension_semantics = [#tpu.dimension_semantics<parallel>], iteration_bounds = array<i64: 2>, scalar_prefetch = 0 : i64, scratch_operands = 0 : i64, tpu.core_type = #tpu.core_type<tc>, window_params = [{transform_indices = @transform_0, window_bounds = array<i64: 8, 32>}, {pipeline_mode = #tpu.pipeline_mode<synchronous>, transform_indices = @transform_1, window_bounds = array<i64: 32, 128>}, {pipeline_mode = #tpu.pipeline_mode<synchronous>, transform_indices = @transform_2, window_bounds = array<i64: 1, 128>}, {pipeline_mode = #tpu.pipeline_mode<synchronous>, transform_indices = @transform_3, window_bounds = array<i64: 128, 32>}, {pipeline_mode = #tpu.pipeline_mode<synchronous>, transform_indices = @transform_4, window_bounds = array<i64: 1, 32>}, {transform_indices = @transform_5, window_bounds = array<i64: 8, 32>}]} {
    %c0 = arith.constant 0 : index
    %c0_0 = arith.constant 0 : index
    %0 = vector.load %arg1[%c0, %c0_0] : memref<8x32xf32, #tpu.memory_space<vmem>>, vector<8x32xf32>
    %c0_1 = arith.constant 0 : index
    %c0_2 = arith.constant 0 : index
    %1 = vector.load %arg2[%c0_1, %c0_2] : memref<32x128xf32, #tpu.memory_space<vmem>>, vector<32x128xf32>
    %cst = arith.constant dense<0.000000e+00> : vector<8x128xf32>
    %2 = tpu.matmul %0, %1, %cst {dimension_numbers = #tpu.dot_dimension_numbers<[1], [0], [0], [1], [0, 0, 1, 1], [], []>} : vector<8x32xf32>, vector<32x128xf32>, vector<8x128xf32> -> vector<8x128xf32>
    %c0_3 = arith.constant 0 : index
    %c0_4 = arith.constant 0 : index
    %3 = vector.load %arg3[%c0_3, %c0_4] : memref<1x128xf32, #tpu.memory_space<vmem>>, vector<1x128xf32>
    %4 = vector.broadcast %3 : vector<1x128xf32> to vector<8x128xf32>
    %5 = arith.addf %2, %4 : vector<8x128xf32>
    %cst_5 = arith.constant 5.000000e-01 : f32
    %6 = vector.broadcast %cst_5 : f32 to vector<8x128xf32>
    %7 = arith.mulf %6, %5 : vector<8x128xf32>
    %cst_6 = arith.constant 4.471500e-02 : f32
    %8 = vector.broadcast %cst_6 : f32 to vector<8x128xf32>
    %9 = arith.mulf %8, %5 : vector<8x128xf32>
    %10 = arith.mulf %9, %5 : vector<8x128xf32>
    %11 = arith.mulf %10, %5 : vector<8x128xf32>
    %12 = arith.addf %5, %11 : vector<8x128xf32>
    %cst_7 = arith.constant 0.797884583 : f32
    %13 = vector.broadcast %cst_7 : f32 to vector<8x128xf32>
    %14 = arith.mulf %13, %12 : vector<8x128xf32>
    %15 = math.tanh %14 : vector<8x128xf32>
    %cst_8 = arith.constant 1.000000e+00 : f32
    %16 = vector.broadcast %cst_8 : f32 to vector<8x128xf32>
    %17 = arith.addf %16, %15 : vector<8x128xf32>
    %18 = arith.mulf %7, %17 : vector<8x128xf32>
    %c0_9 = arith.constant 0 : index
    %c0_10 = arith.constant 0 : index
    %19 = vector.load %arg4[%c0_9, %c0_10] : memref<128x32xf32, #tpu.memory_space<vmem>>, vector<128x32xf32>
    %cst_11 = arith.constant dense<0.000000e+00> : vector<8x32xf32>
    %20 = tpu.matmul %18, %19, %cst_11 {dimension_numbers = #tpu.dot_dimension_numbers<[1], [0], [0], [1], [0, 0, 1, 1], [], []>} : vector<8x128xf32>, vector<128x32xf32>, vector<8x32xf32> -> vector<8x32xf32>
    %c0_12 = arith.constant 0 : index
    %c0_13 = arith.constant 0 : index
    %21 = vector.load %arg5[%c0_12, %c0_13] : memref<1x32xf32, #tpu.memory_space<vmem>>, vector<1x32xf32>
    %22 = vector.broadcast %21 : vector<1x32xf32> to vector<8x32xf32>
    %23 = arith.addf %20, %22 : vector<8x32xf32>
    %c0_14 = arith.constant 0 : index
    %c0_15 = arith.constant 0 : index
    %24 = vector.load %arg6[%c0_14, %c0_15] : memref<8x32xf32, #tpu.memory_space<vmem>>, vector<8x32xf32>
    tpu.vector_store %arg6[%c0_14, %c0_15], %23 {strides = array<i32>} : memref<8x32xf32, #tpu.memory_space<vmem>>, vector<8x32xf32>,
    return
  }
  func.func @transform_0(%arg0: i32) -> (i32, i32) {
    %c0_i32 = arith.constant 0 : i32
    %c0_i32_0 = arith.constant 0 : i32
    return %arg0, %c0_i32 : i32, i32
  }
  func.func @transform_1(%arg0: i32) -> (i32, i32) {
    %c0_i32 = arith.constant 0 : i32
    %c0_i32_0 = arith.constant 0 : i32
    %c0_i32_1 = arith.constant 0 : i32
    return %c0_i32, %c0_i32_0 : i32, i32
  }
  func.func @transform_2(%arg0: i32) -> (i32, i32) {
    %c0_i32 = arith.constant 0 : i32
    %c0_i32_0 = arith.constant 0 : i32
    %c0_i32_1 = arith.constant 0 : i32
    return %c0_i32, %c0_i32_0 : i32, i32
  }
  func.func @transform_3(%arg0: i32) -> (i32, i32) {
    %c0_i32 = arith.constant 0 : i32
    %c0_i32_0 = arith.constant 0 : i32
    %c0_i32_1 = arith.constant 0 : i32
    return %c0_i32, %c0_i32_0 : i32, i32
  }
  func.func @transform_4(%arg0: i32) -> (i32, i32) {
    %c0_i32 = arith.constant 0 : i32
    %c0_i32_0 = arith.constant 0 : i32
    %c0_i32_1 = arith.constant 0 : i32
    return %c0_i32, %c0_i32_0 : i32, i32
  }
  func.func @transform_5(%arg0: i32) -> (i32, i32) {
    %c0_i32 = arith.constant 0 : i32
    %c0_i32_0 = arith.constant 0 : i32
    return %arg0, %c0_i32 : i32, i32
  }
}

</mosaic_0001>

<bundles_post_ra>
// kernel: tpu_custom_call.1
= control target key start
LH: loop header
LB: loop body
LE: loop exit
PB: predicated region body
PF: predicated region fallthrough
CT: control target
= control target key end

     0   :  { %10 = vsyncpa [#allocation3], 0  ;;  %s679_s0 = inlined_call_operand.vmem [shape: f32[16,32], index: 0, kind: input, shape index: {}]   ;;  %s680_s1 = inlined_call_operand.vmem [shape: f32[32,128], index: 1, kind: input, shape index: {}]   ;;  %s681_s2 = inlined_call_operand.vmem [shape: f32[1,128], index: 2, kind: input, shape index: {}]   ;;  %s682_s3 = inlined_call_operand.vmem [shape: f32[128,32], index: 3, kind: input, shape index: {}]   ;;  %s683_s4 = inlined_call_operand.vmem [shape: f32[1,32], index: 4, kind: input, shape index: {}]   ;;  %s684_s5 = inlined_call_operand.hbm [shape: f32[16,32], index: 5, kind: output, shape index: {}]  }
   0x1   :  { %12 = vsyncpa [#allocation3 + $0x1], 0  ;;  %s526_s18 = smov 0   ;;  %s528_s19 = smov 0  }
   0x2   :  { %s530_s20 = smov 0   ;;  %s532_s21 = smov 0  }
   0x3 LB: > { %s547_s22 = sadd.s32 4294967295, %s494_s21   ;;  %s378_s23 = sadd.s32 4294967294, %s494_s21   ;;  %s494_s21 = sphi %s532_s21, %s690_s21   ;;  %s490_s20 = sphi %s530_s20, %s689_s20   ;;  %s486_s19 = sphi %s528_s19, %s688_s19   ;;  %s482_s18 = sphi %s526_s18, %s687_s18  }
   0x4   : > { %s551_s24 = sadd.s32 1, %s494_s21   ;;  %s135_s25 = sadd.s32 1, %s490_s20 }
   0x5   : > { %s132_s26 = ssub.s32 %s494_s21, %s551_s24  ;;  %p145_p0 = scmp.ne.s32.totalorder %s490_s20, %s486_s19 }
   0x6   : > { %p133_p1 = scmp.eq.s32.totalorder %s132_s26, 0  ;;  %p146_p2 = scmp.eq.s32.totalorder %s547_s22, 1 }
   0x7   : > { %p151_p3 = scmp.ne.s32.totalorder %s486_s19, %s482_s18  ;;  %p152_p4 = scmp.eq.s32.totalorder %s378_s23, 1 }
   0x8   : > { %s562_s27 = scalar_select %p133_p1, %s490_s20, %s135_s25  }
   0x9   : > { %p564_p5 = por %p146_p2, %p145_p0  ;;  %p568_p6 = por %p152_p4, %p151_p3 }
   0xa   : > { %p381_p7 = scmp.ge.s32.totalorder %s494_s21, 1  ;;  %p189_p8 = scmp.lt.s32.totalorder %s494_s21, 3 }
   0xc   : > { %p190_p9 = pnand %p381_p7, %p189_p8 }
   0xd   : > { %p216_p10 = scmp.lt.s32.totalorder (!%p190_p9), %s547_s22, 1  ;;  %s386_s6 = sshll.u32 (!%p190_p9), %s547_s22, 3 }
   0xe   : > { %193 = sbr.rel (%p190_p9) target bundleno = 307 (0x133), region = 40  ;;  %s314_s9 = scalar_lea.hbm (!%p190_p9), %s684_s5, %s386_s6 }
   0xf   : > { %s318_s14 = sshll.u32 (!%p190_p9), %s314_s9, 4  ;;  %s452_s25 = scalar_lea.hbm (!%p190_p9), %s684_s5, 16  ;;  %s319_s14 = int_to_ptr.hbm [resolvable:$true] %s318_s14 }
  0x13   : > { %v224_v0 = vld [vmem:[%s680_s1 + $0x18] sm:$0xff]  ;;  %v223_v1 = vld [vmem:[%s680_s1 + $0x10] sm:$0xff]  ;;  %v222_v4 = vld [vmem:[%s680_s1 + $0x8] sm:$0xff]  ;;  %s217_s15 = scalar_select %p216_p10, %s547_s22, 1  ;;  %vm229_vm0 = vcmask 261120  }
  0x14   : > { %245 = vmatpush.msra.mxu0 %v224_v0  ;;  %v277_v2 = vld [vmem:[%s682_s3 + $0x78] sm:$0xff]  ;;  %v276_v3 = vld [vmem:[%s682_s3 + $0x70] sm:$0xff]  ;;  %v275_v5 = vld [vmem:[%s682_s3 + $0x68] sm:$0xff]  ;;  %s446_s22 = sshra.s32 %s319_s14, 4  ;;  %s447_s22 = int_to_ptr.hbm [resolvable:$true] %s446_s22 }
  0x15   : > { %282 = vmatpush.msra.mxu1 %v277_v2  ;;  %v221_v6 = vld [vmem:[%s680_s1] sm:$0xff]  ;;  %s383_s26 = sshll.u32 %s217_s15, 3  ;;  %v273_v9 = vld [vmem:[%s682_s3 + $0x58] sm:$0xff]  ;;  %v272_v10 = vld [vmem:[%s682_s3 + $0x50] sm:$0xff]  ;;  %s448_s16 = scalar_lea.hbm %s447_s22, 8 }
  0x16   : > { %246 = vmatpush.msra.mxu0 %v223_v1  ;;  %s219_s7 = scalar_lea.vmem %s679_s0, %s383_s26  ;;  %v274_v7 = vld [vmem:[%s682_s3 + $0x60] sm:$0xff]  ;;  %v271_v11 = vld [vmem:[%s682_s3 + $0x48] sm:$0xff]  ;;  %v269_v13 = vld [vmem:[%s682_s3 + $0x38] sm:$0xff]  ;;  %s213_s26 = sand.u32 1, %s486_s19  }
  0x17   : > { %283 = vmatpush.msra.mxu1 %v276_v3  ;;  %v220_v8 = vld [vmem:[%s219_s7] sm:$0xff]  ;;  %v268_v14 = vld [vmem:[%s682_s3 + $0x30] sm:$0xff]  ;;  %v267_v15 = vld [vmem:[%s682_s3 + $0x28] sm:$0xff]  ;;  %s382_s30 = sshll.u32 %s213_s26, 3  ;;  %s304_s15 = scalar_lea.sflag [#allocation3], %s213_s26 }
  0x18   : > { %247 = vmatpush.msra.mxu0 %v222_v4  ;;  %v270_v12 = vld [vmem:[%s682_s3 + $0x40] sm:$0xff]  ;;  %v265_v17 = vld [vmem:[%s682_s3 + $0x18] sm:$0xff]  ;;  %v264_v18 = vld [vmem:[%s682_s3 + $0x10] sm:$0xff]  ;;  %s215_s12 = scalar_lea.vmem [#allocation2], %s382_s30  ;;  %p449_p11 = scmp.ne.s32.totalorder %s447_s22, %s448_s16 }
  0x19   : > { %284 = vmatpush.msra.mxu1 %v275_v5  ;;  %v266_v16 = vld [vmem:[%s682_s3 + $0x20] sm:$0xff]  ;;  %v263_v19 = vld [vmem:[%s682_s3 + $0x8] sm:$0xff]  ;;  %s316_s13 = sshll.u32 %s215_s12, 4  ;;  %p453_p0 = scmp.lt.s32.totalorder %s447_s22, %s684_s5  ;;  %s317_s13 = int_to_ptr.vmem [resolvable:$true] %s316_s13 }
  0x1a   : > { %248 = vmatpush.msra.mxu0 %v221_v6  ;;  %v262_v20 = vld [vmem:[%s682_s3] sm:$0xff]  ;;  %p450_p12 = pnand %p449_p11, %p564_p5  ;;  %p454_p1 = scmp.lt.s32.totalorder %s452_s25, %s448_s16 }
  0x1b   : > { %384 = vmatmul.msk.f32.vlgmr.msra.gmra.mxu0 %vm229_vm0, %v220_v8  ;;  %285 = vmatpush.msra.mxu1 %v274_v7  ;;  %v428_v21 = vld [vmem:[%s681_s2] ss:$0 sm:$0xff] }
  0x1c   : > { %v429_v33 = vld [vmem:[%s683_s4] ss:$0 sm:$0xff]  ;;  %p451_p13 = pneg %p450_p12  ;;  %p455_p2 = por %p454_p1, %p453_p0 }
  0x1d   : > { %286 = vmatpush.msra.mxu1 %v273_v9 }
  0x1e   : > { %p456_p3 = pnand %p455_p2, %p451_p13 }
  0x1f   : > { %287 = vmatpush.msra.mxu1 %v272_v10 }
  0x21   : > { %288 = vmatpush.msra.mxu1 %v271_v11 }
  0x23   : > { %289 = vmatpush.msra.mxu1 %v270_v12 }
  0x25   : > { %290 = vmatpush.msra.mxu1 %v269_v13 }
  0x27   : > { %291 = vmatpush.msra.mxu1 %v268_v14 }
  0x29   : > { %292 = vmatpush.msra.mxu1 %v267_v15 }
  0x2b   : > { %293 = vmatpush.msra.mxu1 %v266_v16 }
  0x2d   : > { %294 = vmatpush.msra.mxu1 %v265_v17 }
  0x2f   : > { %295 = vmatpush.msra.mxu1 %v264_v18 }
  0x31   : > { %296 = vmatpush.msra.mxu1 %v263_v19 }
  0x33   : > { %297 = vmatpush.msra.mxu1 %v262_v20 }
  0x98   : > { %v250_v22 = vpop.f32.mrf.mxu0 }
  0x99   : > { %v251_v23 = vadd.f32 %v428_v21, %v250_v22 }
  0x9b   : > { %v254_v24 = vmul.f32 0.044715, %v251_v23  ;;  %v253_v30 = vmul.f32 0.5, %v251_v23 }
  0x9d   : > { %v255_v25 = vmul.f32 %v254_v24, %v251_v23 }
  0x9f   : > { %v256_v26 = vmul.f32 %v255_v25, %v251_v23 }
  0xa1   : > { %v257_v27 = vadd.f32 %v256_v26, %v251_v23 }
  0xa3   : > { %v258_v28 = vmul.f32 0.7978846, %v257_v27 }
  0xa5   : > { %430 = vtanh.f32 %v258_v28 }
  0xab   : > { %v431_v29 = vpop.eup %430 }
  0xac   : > { %v260_v31 = vadd.f32 1.0, %v431_v29 }
  0xae   : > { %v261_v32 = vmul.f32 %v260_v31, %v253_v30 }
  0xb0   : > { %298 = vmatmul.f32.vlgmr.msra.gmra.mxu1 %v261_v32 }
 0x12d   : > { %v299_v34 = vpop.f32.mrf.mxu1 }
 0x12e   : > { %v300_v35 = vadd.f32 %v429_v33, %v299_v34 }
 0x130   : > { %302 = vst.msk [vmem:[%s215_s12] sm:$0xff] %vm229_vm0, %v300_v35 }
 0x131   : > { %459 = shalt.err (!%p456_p3)
}
 0x132   : > { %389 = dma.vmem_to_hbm [thread:$0]  (%p564_p5), %s317_s13, 128, %s319_s14, %s304_s15  }
 0x133 PF: > { %p395_p4 = scmp.ge.s32.totalorder %s494_s21, 2  ;;  %s330_s26 = sand.u32 1, %s482_s18  }
 0x134   : > { %s331_s7 = scalar_lea.sflag [#allocation3], %s330_s26 }
 0x135   : > { %p392_p7 = pnand %p395_p4, %p568_p6 }
 0x137   : > { %p393_p8 = pneg %p392_p7 }
 0x139   : > { %477 = dma.done.wait (%p393_p8), %s331_s7, 128  }
 0x13a   : > { %479 = vsyncadd (%p393_p8), %s331_s7, 4294967168  ;;  %p15_p9 = scmp.ge.s32.totalorder %s551_s24, 4   ;;  %s687_s18 = smov %s486_s19 }
 0x13b   : > { %s688_s19 = smov %s490_s20  ;;  %s689_s20 = smov %s562_s27 }
 0x13c   : > { %s690_s21 = smov %s551_s24  ;;  %17 = sbr.rel (!%p15_p9) target bundleno = 3 (0x3), region = 75 }
 0x141   :  { %337 = vsyncpa [#allocation3], 1 }
 0x142   :  { %339 = vsyncpa [#allocation3 + $0x1], 1 }

// kernel: tpu_custom_call.1
= control target key start
LH: loop header
LB: loop body
LE: loop exit
PB: predicated region body
PF: predicated region fallthrough
CT: control target
= control target key end

     0   :  { %10 = vsyncpa [#allocation3], 0  ;;  %s679_s0 = inlined_call_operand.vmem [shape: f32[16,32], index: 0, kind: input, shape index: {}]   ;;  %s680_s1 = inlined_call_operand.vmem [shape: f32[32,128], index: 1, kind: input, shape index: {}]   ;;  %s681_s2 = inlined_call_operand.vmem [shape: f32[1,128], index: 2, kind: input, shape index: {}]   ;;  %s682_s3 = inlined_call_operand.vmem [shape: f32[128,32], index: 3, kind: input, shape index: {}]   ;;  %s683_s4 = inlined_call_operand.vmem [shape: f32[1,32], index: 4, kind: input, shape index: {}]   ;;  %s684_s5 = inlined_call_operand.hbm [shape: f32[16,32], index: 5, kind: output, shape index: {}]  }
   0x1   :  { %12 = vsyncpa [#allocation3 + $0x1], 0  ;;  %s526_s18 = smov 0   ;;  %s528_s19 = smov 0  }
   0x2   :  { %s530_s20 = smov 0   ;;  %s532_s21 = smov 0  }
   0x3 LB: > { %s547_s22 = sadd.s32 4294967295, %s494_s21   ;;  %s378_s23 = sadd.s32 4294967294, %s494_s21   ;;  %s494_s21 = sphi %s532_s21, %s690_s21   ;;  %s490_s20 = sphi %s530_s20, %s689_s20   ;;  %s486_s19 = sphi %s528_s19, %s688_s19   ;;  %s482_s18 = sphi %s526_s18, %s687_s18  }
   0x4   : > { %s551_s24 = sadd.s32 1, %s494_s21   ;;  %s135_s25 = sadd.s32 1, %s490_s20 }
   0x5   : > { %s132_s26 = ssub.s32 %s494_s21, %s551_s24  ;;  %p145_p0 = scmp.ne.s32.totalorder %s490_s20, %s486_s19 }
   0x6   : > { %p133_p1 = scmp.eq.s32.totalorder %s132_s26, 0  ;;  %p146_p2 = scmp.eq.s32.totalorder %s547_s22, 1 }
   0x7   : > { %p151_p3 = scmp.ne.s32.totalorder %s486_s19, %s482_s18  ;;  %p152_p4 = scmp.eq.s32.totalorder %s378_s23, 1 }
   0x8   : > { %s562_s27 = scalar_select %p133_p1, %s490_s20, %s135_s25  }
   0x9   : > { %p564_p5 = por %p146_p2, %p145_p0  ;;  %p568_p6 = por %p152_p4, %p151_p3 }
   0xa   : > { %p381_p7 = scmp.ge.s32.totalorder %s494_s21, 1  ;;  %p189_p8 = scmp.lt.s32.totalorder %s494_s21, 3 }
   0xc   : > { %p190_p9 = pnand %p381_p7, %p189_p8 }
   0xd   : > { %p216_p10 = scmp.lt.s32.totalorder (!%p190_p9), %s547_s22, 1  ;;  %s386_s6 = sshll.u32 (!%p190_p9), %s547_s22, 3 }
   0xe   : > { %193 = sbr.rel (%p190_p9) target bundleno = 307 (0x133), region = 40  ;;  %s314_s9 = scalar_lea.hbm (!%p190_p9), %s684_s5, %s386_s6 }
   0xf   : > { %s318_s14 = sshll.u32 (!%p190_p9), %s314_s9, 4  ;;  %s452_s25 = scalar_lea.hbm (!%p190_p9), %s684_s5, 16  ;;  %s319_s14 = int_to_ptr.hbm [resolvable:$true] %s318_s14 }
  0x13   : > { %v224_v0 = vld [vmem:[%s680_s1 + $0x18] sm:$0xff]  ;;  %v223_v1 = vld [vmem:[%s680_s1 + $0x10] sm:$0xff]  ;;  %v222_v4 = vld [vmem:[%s680_s1 + $0x8] sm:$0xff]  ;;  %s217_s15 = scalar_select %p216_p10, %s547_s22, 1  ;;  %vm229_vm0 = vcmask 261120  }
  0x14   : > { %245 = vmatpush.msra.mxu0 %v224_v0  ;;  %v277_v2 = vld [vmem:[%s682_s3 + $0x78] sm:$0xff]  ;;  %v276_v3 = vld [vmem:[%s682_s3 + $0x70] sm:$0xff]  ;;  %v275_v5 = vld [vmem:[%s682_s3 + $0x68] sm:$0xff]  ;;  %s446_s22 = sshra.s32 %s319_s14, 4  ;;  %s447_s22 = int_to_ptr.hbm [resolvable:$true] %s446_s22 }
  0x15   : > { %282 = vmatpush.msra.mxu1 %v277_v2  ;;  %v221_v6 = vld [vmem:[%s680_s1] sm:$0xff]  ;;  %s383_s26 = sshll.u32 %s217_s15, 3  ;;  %v273_v9 = vld [vmem:[%s682_s3 + $0x58] sm:$0xff]  ;;  %v272_v10 = vld [vmem:[%s682_s3 + $0x50] sm:$0xff]  ;;  %s448_s16 = scalar_lea.hbm %s447_s22, 8 }
  0x16   : > { %246 = vmatpush.msra.mxu0 %v223_v1  ;;  %s219_s7 = scalar_lea.vmem %s679_s0, %s383_s26  ;;  %v274_v7 = vld [vmem:[%s682_s3 + $0x60] sm:$0xff]  ;;  %v271_v11 = vld [vmem:[%s682_s3 + $0x48] sm:$0xff]  ;;  %v269_v13 = vld [vmem:[%s682_s3 + $0x38] sm:$0xff]  ;;  %s213_s26 = sand.u32 1, %s486_s19  }
  0x17   : > { %283 = vmatpush.msra.mxu1 %v276_v3  ;;  %v220_v8 = vld [vmem:[%s219_s7] sm:$0xff]  ;;  %v268_v14 = vld [vmem:[%s682_s3 + $0x30] sm:$0xff]  ;;  %v267_v15 = vld [vmem:[%s682_s3 + $0x28] sm:$0xff]  ;;  %s382_s30 = sshll.u32 %s213_s26, 3  ;;  %s304_s15 = scalar_lea.sflag [#allocation3], %s213_s26 }
  0x18   : > { %247 = vmatpush.msra.mxu0 %v222_v4  ;;  %v270_v12 = vld [vmem:[%s682_s3 + $0x40] sm:$0xff]  ;;  %v265_v17 = vld [vmem:[%s682_s3 + $0x18] sm:$0xff]  ;;  %v264_v18 = vld [vmem:[%s682_s3 + $0x10] sm:$0xff]  ;;  %s215_s12 = scalar_lea.vmem [#allocation2], %s382_s30  ;;  %p449_p11 = scmp.ne.s32.totalorder %s447_s22, %s448_s16 }
  0x19   : > { %284 = vmatpush.msra.mxu1 %v275_v5  ;;  %v266_v16 = vld [vmem:[%s682_s3 + $0x20] sm:$0xff]  ;;  %v263_v19 = vld [vmem:[%s682_s3 + $0x8] sm:$0xff]  ;;  %s316_s13 = sshll.u32 %s215_s12, 4  ;;  %p453_p0 = scmp.lt.s32.totalorder %s447_s22, %s684_s5  ;;  %s317_s13 = int_to_ptr.vmem [resolvable:$true] %s316_s13 }
  0x1a   : > { %248 = vmatpush.msra.mxu0 %v221_v6  ;;  %v262_v20 = vld [vmem:[%s682_s3] sm:$0xff]  ;;  %p450_p12 = pnand %p449_p11, %p564_p5  ;;  %p454_p1 = scmp.lt.s32.totalorder %s452_s25, %s448_s16 }
  0x1b   : > { %384 = vmatmul.msk.f32.vlgmr.msra.gmra.mxu0 %vm229_vm0, %v220_v8  ;;  %285 = vmatpush.msra.mxu1 %v274_v7  ;;  %v428_v21 = vld [vmem:[%s681_s2] ss:$0 sm:$0xff] }
  0x1c   : > { %v429_v33 = vld [vmem:[%s683_s4] ss:$0 sm:$0xff]  ;;  %p451_p13 = pneg %p450_p12  ;;  %p455_p2 = por %p454_p1, %p453_p0 }
  0x1d   : > { %286 = vmatpush.msra.mxu1 %v273_v9 }
  0x1e   : > { %p456_p3 = pnand %p455_p2, %p451_p13 }
  0x1f   : > { %287 = vmatpush.msra.mxu1 %v272_v10 }
  0x21   : > { %288 = vmatpush.msra.mxu1 %v271_v11 }
  0x23   : > { %289 = vmatpush.msra.mxu1 %v270_v12 }
  0x25   : > { %290 = vmatpush.msra.mxu1 %v269_v13 }
  0x27   : > { %291 = vmatpush.msra.mxu1 %v268_v14 }
  0x29   : > { %292 = vmatpush.msra.mxu1 %v267_v15 }
  0x2b   : > { %293 = vmatpush.msra.mxu1 %v266_v16 }
  0x2d   : > { %294 = vmatpush.msra.mxu1 %v265_v17 }
  0x2f   : > { %295 = vmatpush.msra.mxu1 %v264_v18 }
  0x31   : > { %296 = vmatpush.msra.mxu1 %v263_v19 }
  0x33   : > { %297 = vmatpush.msra.mxu1 %v262_v20 }
  0x98   : > { %v250_v22 = vpop.f32.mrf.mxu0 }
  0x99   : > { %v251_v23 = vadd.f32 %v428_v21, %v250_v22 }
  0x9b   : > { %v254_v24 = vmul.f32 0.044715, %v251_v23  ;;  %v253_v30 = vmul.f32 0.5, %v251_v23 }
  0x9d   : > { %v255_v25 = vmul.f32 %v254_v24, %v251_v23 }
  0x9f   : > { %v256_v26 = vmul.f32 %v255_v25, %v251_v23 }
  0xa1   : > { %v257_v27 = vadd.f32 %v256_v26, %v251_v23 }
  0xa3   : > { %v258_v28 = vmul.f32 0.7978846, %v257_v27 }
  0xa5   : > { %430 = vtanh.f32 %v258_v28 }
  0xab   : > { %v431_v29 = vpop.eup %430 }
  0xac   : > { %v260_v31 = vadd.f32 1.0, %v431_v29 }
  0xae   : > { %v261_v32 = vmul.f32 %v260_v31, %v253_v30 }
  0xb0   : > { %298 = vmatmul.f32.vlgmr.msra.gmra.mxu1 %v261_v32 }
 0x12d   : > { %v299_v34 = vpop.f32.mrf.mxu1 }
 0x12e   : > { %v300_v35 = vadd.f32 %v429_v33, %v299_v34 }
 0x130   : > { %302 = vst.msk [vmem:[%s215_s12] sm:$0xff] %vm229_vm0, %v300_v35 }
 0x131   : > { %459 = shalt.err (!%p456_p3)
}
 0x132   : > { %389 = dma.vmem_to_hbm [thread:$0]  (%p564_p5), %s317_s13, 128, %s319_s14, %s304_s15  }
 0x133 PF: > { %p395_p4 = scmp.ge.s32.totalorder %s494_s21, 2  ;;  %s330_s26 = sand.u32 1, %s482_s18  }
 0x134   : > { %s331_s7 = scalar_lea.sflag [#allocation3], %s330_s26 }
 0x135   : > { %p392_p7 = pnand %p395_p4, %p568_p6 }
 0x137   : > { %p393_p8 = pneg %p392_p7 }
 0x139   : > { %477 = dma.done.wait (%p393_p8), %s331_s7, 128  }
 0x13a   : > { %479 = vsyncadd (%p393_p8), %s331_s7, 4294967168  ;;  %p15_p9 = scmp.ge.s32.totalorder %s551_s24, 4   ;;  %s687_s18 = smov %s486_s19 }
 0x13b   : > { %s688_s19 = smov %s490_s20  ;;  %s689_s20 = smov %s562_s27 }
 0x13c   : > { %s690_s21 = smov %s551_s24  ;;  %17 = sbr.rel (!%p15_p9) target bundleno = 3 (0x3), region = 75 }
 0x141   :  { %337 = vsyncpa [#allocation3], 1 }
 0x142   :  { %339 = vsyncpa [#allocation3 + $0x1], 1 }

</bundles_post_ra>
